<compile_context>
chip_gen: v7x
topology: tpu7x:2x2x1
jax: 0.10.0
libtpu: 0.0.40
codegen_flags: <defaults>
</compile_context>

<pallas_src>
import jax
import jax.numpy as jnp
from jax.experimental import pallas as pl
from jax.experimental.pallas import tpu as pltpu

LANE = 128


def _round_up(n, m):
    return ((n + m - 1) // m) * m


def _largest_divisor_leq(n, k):
    k = max(1, min(n, k))
    for d in range(k, 0, -1):
        if n % d == 0:
            return d
    return 1


def _pool_kernel(x_ref, sum_ref):
    """x_ref: (Bt, C, T) in the I/O dtype; sum_ref: (Bt, C) f32 accumulator.

    The output block index depends only on the batch axis, so sum_ref stays
    resident in VMEM across the whole HW-tile (reduction) axis.
    """
    t = pl.program_id(1)

    @pl.when(t == 0)
    def _():
        sum_ref[...] = jnp.zeros_like(sum_ref)

    # Accumulate per-channel sums in f32 (cross-lane reduce on the XLU);
    # no materialized full-precision copy of the tile is kept live.
    sum_ref[...] += jnp.sum(x_ref[...], axis=-1, dtype=jnp.float32)


def _scale_kernel(x_ref, s_ref, o_ref):
    """x_ref/o_ref: (Bt, C, T); s_ref: (Bt, C) already cast to the I/O dtype.

    The (Bt, C) -> (Bt, C, T) lane-broadcast is a sublane-broadcast multiply
    on the VPU; multiply stays in the I/O dtype (no f32 slab).
    """
    o_ref[...] = x_ref[...] * s_ref[...][..., None]


def ca_layer(x, w1, b1, w2, b2, *,
             lane_tile=2048,
             tile_bytes_target=2 * 1024 * 1024,
             vmem_limit_bytes=32 * 1024 * 1024):
    """x: (B, C, H, W) NCHW; w1: (C//r, C); b1: (C//r,); w2: (C, C//r); b2: (C,)."""
    B, C, H, W = x.shape
    HW = H * W
    itemsize = x.dtype.itemsize

    # ---- tiling --------------------------------------------------------
    # Lane tile: multiple of 128 (lane-dense, unmasked stores), at most
    # `lane_tile` lanes.  Pad HW up to a multiple of T if needed; padded
    # zero lanes do not perturb the sums (we divide by the true HW) and are
    # sliced off from the output.
    T = min(_round_up(HW, LANE), lane_tile)
    HWp = _round_up(HW, T)
    n_t = HWp // T
    # Batch block: amortize the ~0.35 us/step overhead when images are small.
    per_image_tile = C * T * itemsize
    Bt = _largest_divisor_leq(B, max(1, tile_bytes_target // max(per_image_tile, 1)))
    n_b = B // Bt
    # TODO(synk): with B == 1 the pool pass has no parallel axis left for
    # v7x's second TensorCore (the HW axis is its reduction axis); the scale
    # pass (2/3 of the traffic) still parallelizes over HW tiles.

    x2 = x.reshape(B, C, HW)
    if HWp != HW:
        x2 = jnp.pad(x2, ((0, 0), (0, 0), (0, HWp - HW)))

    cparams_pool = pltpu.CompilerParams(
        dimension_semantics=("parallel", "arbitrary"),
        vmem_limit_bytes=vmem_limit_bytes)
    cparams_scale = pltpu.CompilerParams(
        dimension_semantics=("parallel", "parallel"),
        vmem_limit_bytes=vmem_limit_bytes)

    # ---- pass A: streaming global average pool (per-channel sums) -------
    sums = pl.pallas_call(
        _pool_kernel,
        out_shape=jax.ShapeDtypeStruct((n_b, Bt, C), jnp.float32),
        grid=(n_b, n_t),
        in_specs=[pl.BlockSpec((Bt, C, T), lambda b, t: (b, 0, t))],
        out_specs=pl.BlockSpec((None, Bt, C), lambda b, t: (b, 0, 0)),
        compiler_params=cparams_pool,
    )(x2)

    # ---- tiny squeeze-excite, batched over B, in plain XLA (f32) ---------
    means = sums.reshape(B, C) / jnp.float32(HW)                    # true HW
    z = jnp.maximum(means @ w1.astype(jnp.float32).T
                    + b1.astype(jnp.float32), 0.0)                  # (B, C//r)
    s = jax.nn.sigmoid(z @ w2.astype(jnp.float32).T
                       + b2.astype(jnp.float32))                    # (B, C)
    s = s.astype(x.dtype).reshape(n_b, Bt, C)

    # ---- pass B: streaming channel-wise rescale --------------------------
    out = pl.pallas_call(
        _scale_kernel,
        out_shape=jax.ShapeDtypeStruct((B, C, HWp), x.dtype),
        grid=(n_b, n_t),
        in_specs=[
            pl.BlockSpec((Bt, C, T), lambda b, t: (b, 0, t)),       # x tile
            pl.BlockSpec((None, Bt, C), lambda b, t: (b, 0, 0)),    # per-batch scale
        ],
        out_specs=pl.BlockSpec((Bt, C, T), lambda b, t: (b, 0, t)),
        compiler_params=cparams_scale,
    )(x2, s)

    if HWp != HW:
        out = out[:, :, :HW]
    return out.reshape(B, C, H, W)


def ca_layer_ref(x, w1, b1, w2, b2):
    """Pure-JAX reference matching the PyTorch forward."""
    m = jnp.mean(x, axis=(2, 3), keepdims=True)                     # (B, C, 1, 1)
    y = jnp.einsum("oc,bcxy->boxy", w1, m) + b1[None, :, None, None]
    y = jnp.maximum(y, 0.0)
    y = jnp.einsum("oc,bcxy->boxy", w2, y) + b2[None, :, None, None]
    y = jax.nn.sigmoid(y)
    return x * y


if __name__ == "__main__":
    B, C, H, W = 2, 32, 16, 16
    reduction = 16
    Cr = C // reduction

    key = jax.random.PRNGKey(0)
    kx, k1, k2, k3, k4 = jax.random.split(key, 5)

    x = jax.random.normal(kx, (B, C, H, W), dtype=jnp.float32)
    # 1x1 convs are just (out, in) matrices + bias
    w1 = 0.1 * jax.random.normal(k1, (Cr, C), dtype=jnp.float32)
    b1 = 0.1 * jax.random.normal(k2, (Cr,), dtype=jnp.float32)
    w2 = 0.1 * jax.random.normal(k3, (C, Cr), dtype=jnp.float32)
    b2 = 0.1 * jax.random.normal(k4, (C,), dtype=jnp.float32)

    out = jax.jit(ca_layer)(x, w1, b1, w2, b2)
    out = jax.block_until_ready(out)

    ref = ca_layer_ref(x, w1, b1, w2, b2)
    assert out.shape == (B, C, H, W)
    assert jnp.allclose(out, ref, atol=1e-5, rtol=1e-5), "mismatch vs reference"

    print("KERNEL_OK")
</pallas_src>

<mosaic_0001>
module attributes {stable_mosaic.version = 11 : i64} {
  func.func @_scale_kernel(%arg0: i32, %arg1: i32, %arg2: memref<2x32x256xf32, #tpu.memory_space<vmem>>, %arg3: memref<1x2x32xf32, #tpu.memory_space<vmem>>, %arg4: memref<2x32x256xf32, #tpu.memory_space<vmem>>) attributes {dimension_semantics = [#tpu.dimension_semantics<parallel>, #tpu.dimension_semantics<parallel>], iteration_bounds = array<i64: 1, 1>, scalar_prefetch = 0 : i64, scratch_operands = 0 : i64, tpu.core_type = #tpu.core_type<tc>, window_params = [{transform_indices = @transform_0, window_bounds = array<i64: 2, 32, 256>}, {transform_indices = @transform_1, window_bounds = array<i64: 1, 2, 32>}, {transform_indices = @transform_2, window_bounds = array<i64: 2, 32, 256>}]} {
    %c0 = arith.constant 0 : index
    %c0_0 = arith.constant 0 : index
    %c0_1 = arith.constant 0 : index
    %0 = vector.load %arg2[%c0, %c0_0, %c0_1] : memref<2x32x256xf32, #tpu.memory_space<vmem>>, vector<2x32x256xf32>
    %c0_2 = arith.constant 0 : index
    %c0_3 = arith.constant 0 : index
    %c0_4 = arith.constant 0 : index
    %1 = vector.load %arg3[%c0_2, %c0_3, %c0_4] : memref<1x2x32xf32, #tpu.memory_space<vmem>>, vector<1x2x32xf32>
    %2 = vector.shape_cast %1 : vector<1x2x32xf32> to vector<2x32xf32>
    %3 = vector.shape_cast %2 : vector<2x32xf32> to vector<2x32x1xf32>
    %4 = vector.broadcast %3 : vector<2x32x1xf32> to vector<2x32x256xf32>
    %5 = arith.mulf %0, %4 : vector<2x32x256xf32>
    %c0_5 = arith.constant 0 : index
    %c0_6 = arith.constant 0 : index
    %c0_7 = arith.constant 0 : index
    %6 = vector.load %arg4[%c0_5, %c0_6, %c0_7] : memref<2x32x256xf32, #tpu.memory_space<vmem>>, vector<2x32x256xf32>
    tpu.vector_store %arg4[%c0_5, %c0_6, %c0_7], %5 {strides = array<i32>} : memref<2x32x256xf32, #tpu.memory_space<vmem>>, vector<2x32x256xf32>,
    return
  }
  func.func @transform_0(%arg0: i32, %arg1: i32) -> (i32, i32, i32) {
    %c0_i32 = arith.constant 0 : i32
    %c0_i32_0 = arith.constant 0 : i32
    return %arg0, %c0_i32, %arg1 : i32, i32, i32
  }
  func.func @transform_1(%arg0: i32, %arg1: i32) -> (i32, i32, i32) {
    %c0_i32 = arith.constant 0 : i32
    %c0_i32_0 = arith.constant 0 : i32
    %c0_i32_1 = arith.constant 0 : i32
    return %arg0, %c0_i32, %c0_i32_0 : i32, i32, i32
  }
  func.func @transform_2(%arg0: i32, %arg1: i32) -> (i32, i32, i32) {
    %c0_i32 = arith.constant 0 : i32
    %c0_i32_0 = arith.constant 0 : i32
    return %arg0, %c0_i32, %arg1 : i32, i32, i32
  }
}

module attributes {stable_mosaic.version = 11 : i64} {
  func.func @_pool_kernel(%arg0: i32, %arg1: i32, %arg2: memref<2x32x256xf32, #tpu.memory_space<vmem>>, %arg3: memref<1x2x32xf32, #tpu.memory_space<vmem>>) attributes {dimension_semantics = [#tpu.dimension_semantics<parallel>, #tpu.dimension_semantics<arbitrary>], iteration_bounds = array<i64: 1, 1>, scalar_prefetch = 0 : i64, scratch_operands = 0 : i64, tpu.core_type = #tpu.core_type<tc>, window_params = [{transform_indices = @transform_0, window_bounds = array<i64: 2, 32, 256>}, {transform_indices = @transform_1, window_bounds = array<i64: 1, 2, 32>}]} {
    %c0_i32 = arith.constant 0 : i32
    %0 = arith.cmpi eq, %arg1, %c0_i32 : i32
    %1 = arith.extui %0 : i1 to i32
    %c0_i32_0 = arith.constant 0 : i32
    %2 = arith.cmpi ne, %1, %c0_i32_0 : i32
    scf.if %2 {
      %cst_9 = arith.constant 0.000000e+00 : f32
      %11 = vector.broadcast %cst_9 : f32 to vector<2x32xf32>
      %c0_10 = arith.constant 0 : index
      %c0_11 = arith.constant 0 : index
      %c0_12 = arith.constant 0 : index
      %12 = vector.load %arg3[%c0_10, %c0_11, %c0_12] : memref<1x2x32xf32, #tpu.memory_space<vmem>>, vector<1x2x32xf32>
      %13 = vector.shape_cast %12 : vector<1x2x32xf32> to vector<2x32xf32>
      %14 = vector.shape_cast %11 : vector<2x32xf32> to vector<1x2x32xf32>
      tpu.vector_store %arg3[%c0_10, %c0_11, %c0_12], %14 {strides = array<i32>} : memref<1x2x32xf32, #tpu.memory_space<vmem>>, vector<1x2x32xf32>,
    } else {
    }
    %c0 = arith.constant 0 : index
    %c0_1 = arith.constant 0 : index
    %c0_2 = arith.constant 0 : index
    %3 = vector.load %arg3[%c0, %c0_1, %c0_2] : memref<1x2x32xf32, #tpu.memory_space<vmem>>, vector<1x2x32xf32>
    %4 = vector.shape_cast %3 : vector<1x2x32xf32> to vector<2x32xf32>
    %c0_3 = arith.constant 0 : index
    %c0_4 = arith.constant 0 : index
    %c0_5 = arith.constant 0 : index
    %5 = vector.load %arg2[%c0_3, %c0_4, %c0_5] : memref<2x32x256xf32, #tpu.memory_space<vmem>>, vector<2x32x256xf32>
    %cst = arith.constant dense<0.000000e+00> : vector<2x32xf32>
    %6 = vector.multi_reduction <add>, %5, %cst [2] : vector<2x32x256xf32> to vector<2x32xf32>
    %7 = arith.addf %4, %6 : vector<2x32xf32>
    %c0_6 = arith.constant 0 : index
    %c0_7 = arith.constant 0 : index
    %c0_8 = arith.constant 0 : index
    %8 = vector.load %arg3[%c0_6, %c0_7, %c0_8] : memref<1x2x32xf32, #tpu.memory_space<vmem>>, vector<1x2x32xf32>
    %9 = vector.shape_cast %8 : vector<1x2x32xf32> to vector<2x32xf32>
    %10 = vector.shape_cast %7 : vector<2x32xf32> to vector<1x2x32xf32>
    tpu.vector_store %arg3[%c0_6, %c0_7, %c0_8], %10 {strides = array<i32>} : memref<1x2x32xf32, #tpu.memory_space<vmem>>, vector<1x2x32xf32>,
    return
  }
  func.func @transform_0(%arg0: i32, %arg1: i32) -> (i32, i32, i32) {
    %c0_i32 = arith.constant 0 : i32
    %c0_i32_0 = arith.constant 0 : i32
    return %arg0, %c0_i32, %arg1 : i32, i32, i32
  }
  func.func @transform_1(%arg0: i32, %arg1: i32) -> (i32, i32, i32) {
    %c0_i32 = arith.constant 0 : i32
    %c0_i32_0 = arith.constant 0 : i32
    %c0_i32_1 = arith.constant 0 : i32
    return %arg0, %c0_i32, %c0_i32_0 : i32, i32, i32
  }
}

</mosaic_0001>

<bundles_post_ra>
// kernel: ca_layer.3
= control target key start
LH: loop header
LB: loop body
LE: loop exit
PB: predicated region body
PF: predicated region fallthrough
CT: control target
= control target key end

     0   :  { %v28_v0 = vlaneseq  ;;  %s216_s1 = inlined_call_operand.vmem [shape: f32[1,2,32], index: 1, kind: input, shape index: {}]   ;;  %s217_s0 = inlined_call_operand.vmem [shape: f32[2,32,256], index: 0, kind: input, shape index: {}]   ;;  %s218_s2 = inlined_call_operand.vmem [shape: f32[2,32,256], index: 2, kind: output, shape index: {}]  }
   0x1   :  { %v27_v2 = vld [vmem:[%s216_s1] sm:$0x3]  ;;  %v16_v8 = vld [vmem:[%s217_s0 + $0x28] sm:$0xff]  ;;  %v17_v17 = vld [vmem:[%s217_s0 + $0x30] sm:$0xff] }
   0x2   :  { %v29_v1 = vshrl.u32 %v28_v0, 7  ;;  %v15_v7 = vld [vmem:[%s217_s0 + $0x20] sm:$0xff]  ;;  %v12_v10 = vld [vmem:[%s217_s0 + $0x8] sm:$0xff]  ;;  %v18_v18 = vld [vmem:[%s217_s0 + $0x38] sm:$0xff] }
   0x3   :  { %v11_v9 = vld [vmem:[%s217_s0] sm:$0xff]  ;;  %v13_v19 = vld [vmem:[%s217_s0 + $0x10] sm:$0xff]  ;;  %v14_v20 = vld [vmem:[%s217_s0 + $0x18] sm:$0xff] }
   0x4   :  { %v30_v3 = vsub.s32 0, %v29_v1  ;;  %v49_v5 = vsub.s32 1, %v29_v1  ;;  %v21_v27 = vld [vmem:[%s217_s0 + $0x50] sm:$0xff]  ;;  %v22_v28 = vld [vmem:[%s217_s0 + $0x58] sm:$0xff]  ;;  %v19_v29 = vld [vmem:[%s217_s0 + $0x40] sm:$0xff] }
   0x5   :  { %v20_v30 = vld [vmem:[%s217_s0 + $0x48] sm:$0xff]  ;;  %v25_v37 = vld [vmem:[%s217_s0 + $0x70] sm:$0xff]  ;;  %v26_v38 = vld [vmem:[%s217_s0 + $0x78] sm:$0xff] }
   0x6   :  { %v31_v4 = vrot.slane %v27_v2, %v30_v3  ;;  %v50_v6 = vrot.slane %v27_v2, %v49_v5  ;;  %v23_v39 = vld [vmem:[%s217_s0 + $0x60] sm:$0xff]  ;;  %v24_v40 = vld [vmem:[%s217_s0 + $0x68] sm:$0xff] }
   0x8   :  { %41 = vbcast.lane.b32.xlu1 %v31_v4, 272  ;;  %33 = vbcast.lane.b32.xlu0 %v31_v4, 256 }
   0xc   :  { %45 = vbcast.lane.b32.xlu1 %v31_v4, 280  ;;  %37 = vbcast.lane.b32.xlu0 %v31_v4, 264 }
  0x10   :  { %56 = vbcast.lane.b32.xlu1 %v50_v6, 264  ;;  %52 = vbcast.lane.b32.xlu0 %v50_v6, 256 }
  0x14   :  { %64 = vbcast.lane.b32.xlu1 %v50_v6, 280  ;;  %60 = vbcast.lane.b32.xlu0 %v50_v6, 272 }
  0x7a   :  { %v42_v11 = vpop.permute.xlu1 %41  ;;  %v34_v12 = vpop.permute.xlu0 %33 }
  0x7b   :  { %v70_v13 = vmul.f32 %v42_v11, %v15_v7  ;;  %v71_v14 = vmul.f32 %v42_v11, %v16_v8  ;;  %v66_v15 = vmul.f32 %v34_v12, %v11_v9  ;;  %v67_v16 = vmul.f32 %v34_v12, %v12_v10 }
  0x7d   :  { %86 = vst [vmem:[%s218_s2 + $0x20] sm:$0xff] %v70_v13  ;;  %87 = vst [vmem:[%s218_s2 + $0x28] sm:$0xff] %v71_v14 }
  0x7e   :  { %82 = vst [vmem:[%s218_s2] sm:$0xff] %v66_v15  ;;  %83 = vst [vmem:[%s218_s2 + $0x8] sm:$0xff] %v67_v16  ;;  %v46_v21 = vpop.permute.xlu1 %45  ;;  %v38_v22 = vpop.permute.xlu0 %37 }
  0x7f   :  { %v72_v23 = vmul.f32 %v46_v21, %v17_v17  ;;  %v73_v24 = vmul.f32 %v46_v21, %v18_v18  ;;  %v68_v25 = vmul.f32 %v38_v22, %v13_v19  ;;  %v69_v26 = vmul.f32 %v38_v22, %v14_v20 }
  0x81   :  { %88 = vst [vmem:[%s218_s2 + $0x30] sm:$0xff] %v72_v23  ;;  %89 = vst [vmem:[%s218_s2 + $0x38] sm:$0xff] %v73_v24 }
  0x82   :  { %84 = vst [vmem:[%s218_s2 + $0x10] sm:$0xff] %v68_v25  ;;  %85 = vst [vmem:[%s218_s2 + $0x18] sm:$0xff] %v69_v26  ;;  %v57_v31 = vpop.permute.xlu1 %56  ;;  %v53_v32 = vpop.permute.xlu0 %52 }
  0x83   :  { %v76_v33 = vmul.f32 %v57_v31, %v21_v27  ;;  %v77_v34 = vmul.f32 %v57_v31, %v22_v28  ;;  %v74_v35 = vmul.f32 %v53_v32, %v19_v29  ;;  %v75_v36 = vmul.f32 %v53_v32, %v20_v30 }
  0x85   :  { %92 = vst [vmem:[%s218_s2 + $0x50] sm:$0xff] %v76_v33  ;;  %93 = vst [vmem:[%s218_s2 + $0x58] sm:$0xff] %v77_v34 }
  0x86   :  { %90 = vst [vmem:[%s218_s2 + $0x40] sm:$0xff] %v74_v35  ;;  %91 = vst [vmem:[%s218_s2 + $0x48] sm:$0xff] %v75_v36  ;;  %v65_v41 = vpop.permute.xlu1 %64  ;;  %v61_v42 = vpop.permute.xlu0 %60 }
  0x87   :  { %v80_v43 = vmul.f32 %v65_v41, %v25_v37  ;;  %v81_v44 = vmul.f32 %v65_v41, %v26_v38  ;;  %v78_v45 = vmul.f32 %v61_v42, %v23_v39  ;;  %v79_v46 = vmul.f32 %v61_v42, %v24_v40 }
  0x89   :  { %96 = vst [vmem:[%s218_s2 + $0x70] sm:$0xff] %v80_v43  ;;  %97 = vst [vmem:[%s218_s2 + $0x78] sm:$0xff] %v81_v44 }
  0x8a   :  { %94 = vst [vmem:[%s218_s2 + $0x60] sm:$0xff] %v78_v45  ;;  %95 = vst [vmem:[%s218_s2 + $0x68] sm:$0xff] %v79_v46 }

// kernel: ca_layer.2
= control target key start
LH: loop header
LB: loop body
LE: loop exit
PB: predicated region body
PF: predicated region fallthrough
CT: control target
= control target key end

     0   :  { %vm12_vm0 = vcmask 254976   ;;  %v120_v24 = vmov 0.0   ;;  %v63_v25 = vlaneseq  ;;  %vm74_vm1 = vcmask 130112   ;;  %s190_s0 = inlined_call_operand.vmem [shape: f32[2,32,256], index: 0, kind: input, shape index: {}]   ;;  %s191_s1 = inlined_call_operand.vmem [shape: f32[1,2,32], index: 1, kind: output, shape index: {}]  }
   0x1   :  { %v23_v0 = vld [vmem:[%s190_s0 + $0x40] sm:$0xff]  ;;  %v24_v1 = vld [vmem:[%s190_s0 + $0x48] sm:$0xff]  ;;  %v25_v5 = vld [vmem:[%s190_s0 + $0x50] sm:$0xff]  ;;  %13 = vst.msk [vmem:[%s191_s1] sm:$0x3] %vm12_vm0, %v120_v24  ;;  %vm81_vm2 = vcmask 195712  }
   0x2   :  { %v15_v2 = vld [vmem:[%s190_s0] sm:$0xff]  ;;  %v43_v3 = vadd.f32 %v24_v1, %v23_v0  ;;  %v16_v4 = vld [vmem:[%s190_s0 + $0x8] sm:$0xff]  ;;  %v26_v6 = vld [vmem:[%s190_s0 + $0x58] sm:$0xff]  ;;  %v64_v26 = vand.u32 127, %v63_v25  ;;  %v66_v31 = vshrl.u32 %v63_v25, 7  ;;  %vm88_vm3 = vcmask 261312  }
   0x3   :  { %v31_v7 = vadd.f32 %v16_v4, %v15_v2  ;;  %v17_v8 = vld [vmem:[%s190_s0 + $0x10] sm:$0xff]  ;;  %v18_v9 = vld [vmem:[%s190_s0 + $0x18] sm:$0xff]  ;;  %v46_v10 = vadd.f32 %v26_v6, %v25_v5  ;;  %v27_v12 = vld [vmem:[%s190_s0 + $0x60] sm:$0xff]  ;;  %vm109_vm4 = vcmask 1041409  }
   0x4   :  { %44 = vadd.xlane.f32.xlu1 %v43_v3  ;;  %v34_v11 = vadd.f32 %v18_v9, %v17_v8  ;;  %v28_v13 = vld [vmem:[%s190_s0 + $0x68] sm:$0xff]  ;;  %v19_v14 = vld [vmem:[%s190_s0 + $0x20] sm:$0xff]  ;;  %v29_v18 = vld [vmem:[%s190_s0 + $0x70] sm:$0xff]  ;;  %v69_v29 = vadd.s32 4294967288, %v64_v26  ;;  %v76_v30 = vadd.s32 4294967280, %v64_v26  ;;  %v83_v35 = vadd.s32 4294967272, %v64_v26 }
   0x5   :  { %32 = vadd.xlane.f32.xlu0 %v31_v7  ;;  %v20_v15 = vld [vmem:[%s190_s0 + $0x28] sm:$0xff]  ;;  %v49_v16 = vadd.f32 %v28_v13, %v27_v12  ;;  %v30_v19 = vld [vmem:[%s190_s0 + $0x78] sm:$0xff]  ;;  %v21_v20 = vld [vmem:[%s190_s0 + $0x30] sm:$0xff]  ;;  %v67_v37 = vsub.s32 %v64_v26, %v66_v31 }
   0x6   :  { %v37_v17 = vadd.f32 %v20_v15, %v19_v14  ;;  %v22_v21 = vld [vmem:[%s190_s0 + $0x38] sm:$0xff]  ;;  %v52_v22 = vadd.f32 %v30_v19, %v29_v18  ;;  %v72_v33 = vsub.s32 %v69_v29, %v66_v31  ;;  %v79_v36 = vsub.s32 %v76_v30, %v66_v31 }
   0x7   :  { %v40_v23 = vadd.f32 %v22_v21, %v21_v20  ;;  %v86_v41 = vsub.s32 %v83_v35, %v66_v31 }
   0x8   :  { %47 = vadd.xlane.f32.xlu1 %v46_v10  ;;  %v14_v56 = vld [vmem:[%s191_s1] sm:$0x3] }
   0x9   :  { %35 = vadd.xlane.f32.xlu0 %v34_v11 }
   0xc   :  { %50 = vadd.xlane.f32.xlu1 %v49_v16 }
   0xd   :  { %38 = vadd.xlane.f32.xlu0 %v37_v17 }
  0x10   :  { %53 = vadd.xlane.f32.xlu1 %v52_v22 }
  0x11   :  { %41 = vadd.xlane.f32.xlu0 %v40_v23 }
  0x91   :  { %v45_v27 = vpop.xlane.xlu1 %44 }
  0x92   :  { %v33_v28 = vpop.xlane.xlu0 %32  ;;  %v93_v44 = vrot.slane %v45_v27, %v67_v37 }
  0x93   :  { %v68_v46 = vrot.slane %v33_v28, %v67_v37 }
  0x95   :  { %v48_v32 = vpop.xlane.xlu1 %47 }
  0x96   :  { %v36_v34 = vpop.xlane.xlu0 %35  ;;  %v97_v39 = vrot.slane %v48_v32, %v72_v33 }
  0x97   :  { %v73_v42 = vrot.slane %v36_v34, %v72_v33 }
  0x98   :  { %v98_v48 = vsel %vm74_vm1, %v97_v39, %v93_v44 }
  0x99   :  { %v51_v38 = vpop.xlane.xlu1 %50  ;;  %v75_v51 = vsel %vm74_vm1, %v73_v42, %v68_v46 }
  0x9a   :  { %v39_v40 = vpop.xlane.xlu0 %38  ;;  %v102_v43 = vrot.slane %v51_v38, %v79_v36 }
  0x9b   :  { %v80_v45 = vrot.slane %v39_v40, %v79_v36 }
  0x9c   :  { %v103_v52 = vsel %vm81_vm2, %v102_v43, %v98_v48 }
  0x9d   :  { %v54_v47 = vpop.xlane.xlu1 %53  ;;  %v82_v54 = vsel %vm81_vm2, %v80_v45, %v75_v51 }
  0x9e   :  { %v107_v49 = vrot.slane %v54_v47, %v86_v41  ;;  %v42_v50 = vpop.xlane.xlu0 %41 }
  0x9f   :  { %v87_v53 = vrot.slane %v42_v50, %v86_v41 }
  0xa0   :  { %v108_v55 = vsel %vm88_vm3, %v107_v49, %v103_v52 }
  0xa1   :  { %v89_v57 = vsel %vm88_vm3, %v87_v53, %v82_v54 }
  0xa2   :  { %v110_v58 = vsel %vm109_vm4, %v108_v55, %v89_v57 }
  0xa3   :  { %v112_v59 = vadd.f32 %v110_v58, %v14_v56 }
  0xa5   :  { %114 = vst.msk [vmem:[%s191_s1] sm:$0x3] %vm12_vm0, %v112_v59 }

</bundles_post_ra>
